<compile_context>
chip_gen: v5e
topology: v5e:2x2
jax: 0.10.0
libtpu: 0.0.40
codegen_flags: <defaults>
</compile_context>

<pallas_src>
import functools

import jax
import jax.numpy as jnp
from jax import lax
from jax.experimental import pallas as pl
from jax.experimental.pallas import tpu as pltpu

LN_EPS = 1e-5
NEG_INF = -1e30

# ----------------------------------------------------------------------------
# Small helpers: chip-aware VMEM budget + (probed) single-buffered weight specs.
# ----------------------------------------------------------------------------
_VMEM_LIMIT_CACHE = None


def _vmem_limit_bytes():
    global _VMEM_LIMIT_CACHE
    if _VMEM_LIMIT_CACHE is None:
        limit = 64 * 1024 * 1024
        try:
            cap = getattr(pltpu.get_tpu_info(), "vmem_capacity_bytes", None)
            if cap:
                limit = int(cap) * 3 // 4   # ~96 MiB on v5e/v6e, ~48 MiB on v7x
        except Exception:
            pass
        _VMEM_LIMIT_CACHE = limit
    return _VMEM_LIMIT_CACHE


_PIPELINE_MODE_CACHE = "unset"


def _weight_pipeline_mode():
    """pl.Buffered(1) for grid-invariant weight blocks if supported, else None."""
    global _PIPELINE_MODE_CACHE
    if _PIPELINE_MODE_CACHE == "unset":
        mode = None
        try:
            def _probe(x_ref, o_ref):
                o_ref[...] = x_ref[...] + 1.0
            fn = pl.pallas_call(
                _probe,
                out_shape=jax.ShapeDtypeStruct((8, 128), jnp.float32),
                grid=(2,),
                in_specs=[pl.BlockSpec((8, 128), lambda i: (0, 0),
                                       pipeline_mode=pl.Buffered(1))],
                out_specs=pl.BlockSpec((8, 128), lambda i: (0, 0)),
            )
            jax.block_until_ready(fn(jnp.zeros((8, 128), jnp.float32)))
            mode = pl.Buffered(1)
        except Exception:
            mode = None
        _PIPELINE_MODE_CACHE = mode
    return _PIPELINE_MODE_CACHE


def _weight_spec(shape, grid_ndim):
    """Grid-invariant (whole-array) BlockSpec; single-buffered when possible."""
    zeros = (0,) * len(shape)
    if grid_ndim == 2:
        imap = lambda b, i: zeros
    else:
        imap = lambda b, i, j: zeros
    mode = _weight_pipeline_mode()
    if mode is not None:
        return pl.BlockSpec(shape, imap, pipeline_mode=mode)
    return pl.BlockSpec(shape, imap)


def _layernorm(x, w, b):
    mu = jnp.mean(x, axis=-1, keepdims=True)
    var = jnp.mean((x - mu) ** 2, axis=-1, keepdims=True)
    return (x - mu) * lax.rsqrt(var + LN_EPS) * w + b


def _gelu_new(x):
    # GPT-2 "gelu_new" (tanh approximation), kept in f32 (EUP tanh).
    return 0.5 * x * (1.0 + jnp.tanh(0.7978845608028654 * (x + 0.044715 * x * x * x)))


# ----------------------------------------------------------------------------
# Kernel 1: LN1 + fused QKV projection, emits q/k/v already head-major
# (B, H, T, hd) bf16 so no XLA split/reshape/transpose is needed per layer.
# ----------------------------------------------------------------------------
def ln_qkv_kernel(x_ref, ln1w_ref, ln1b_ref, wqkv_ref, bqkv_ref,
                  q_ref, k_ref, v_ref, *, num_heads):
    x = x_ref[0]                                                    # (TQ, D) f32
    D = x.shape[1]
    hd = D // num_heads
    h = _layernorm(x, ln1w_ref[...], ln1b_ref[...]).astype(jnp.bfloat16)
    qkv = jnp.dot(h, wqkv_ref[...],
                  preferred_element_type=jnp.float32) + bqkv_ref[...]
    qkv = qkv.astype(jnp.bfloat16)                                  # (TQ, 3D)
    # Head-major relayout done once in-kernel (lane slices + plain stores).
    for hh in range(num_heads):
        q_ref[0, hh] = qkv[:, hh * hd:(hh + 1) * hd]
        k_ref[0, hh] = qkv[:, D + hh * hd:D + (hh + 1) * hd]
        v_ref[0, hh] = qkv[:, 2 * D + hh * hd:2 * D + (hh + 1) * hd]


def ln_qkv_forward(x, ln1_w, ln1_b, w_qkv, b_qkv, num_heads, q_tile):
    B, T, D = x.shape
    H = num_heads
    hd = D // H
    grid = (B, T // q_tile)
    in_specs = [
        pl.BlockSpec((1, q_tile, D), lambda b, qi: (b, qi, 0)),
        _weight_spec(ln1_w.shape, 2), _weight_spec(ln1_b.shape, 2),
        _weight_spec(w_qkv.shape, 2), _weight_spec(b_qkv.shape, 2),
    ]
    head_spec = pl.BlockSpec((1, H, q_tile, hd), lambda b, qi: (b, 0, qi, 0))
    out_shape = tuple(jax.ShapeDtypeStruct((B, H, T, hd), jnp.bfloat16)
                      for _ in range(3))
    return pl.pallas_call(
        functools.partial(ln_qkv_kernel, num_heads=H),
        out_shape=out_shape,
        grid_spec=pltpu.PrefetchScalarGridSpec(
            num_scalar_prefetch=0, grid=grid,
            in_specs=in_specs,
            out_specs=(head_spec, head_spec, head_spec)),
        compiler_params=pltpu.CompilerParams(
            dimension_semantics=("parallel", "parallel"),
            vmem_limit_bytes=_vmem_limit_bytes()),
    )(x, ln1_w, ln1_b, w_qkv, b_qkv)


# ----------------------------------------------------------------------------
# Kernel 2: flash-style causal attention (online softmax over KV tiles with
# causal tile skipping) + out-proj + MLP; grid = (batch, q-tile, kv-tile).
# ----------------------------------------------------------------------------
def attn_mlp_kernel(x_ref, q_ref, k_ref, v_ref, mask_ref,
                    wo_ref, bo_ref, ln2w_ref, ln2b_ref,
                    wfc_ref, bfc_ref, wproj_ref, bproj_ref,
                    out_ref, m_ref, l_ref, acc_ref, ctx_ref, *, num_heads):
    qi = pl.program_id(1)
    ki = pl.program_id(2)
    n_kv = pl.num_programs(2)
    TQ = q_ref.shape[2]
    TK = k_ref.shape[2]
    hd = q_ref.shape[3]
    scale = 1.0 / float(hd) ** 0.5

    @pl.when(ki == 0)
    def _():
        m_ref[...] = jnp.full(m_ref.shape, NEG_INF, dtype=m_ref.dtype)
        l_ref[...] = jnp.zeros(l_ref.shape, l_ref.dtype)
        acc_ref[...] = jnp.zeros(acc_ref.shape, acc_ref.dtype)

    # Causal tile skip: a KV tile is processed only if its first key index is
    # attendable by the last query row of this query tile.
    @pl.when(ki * TK <= (qi + 1) * TQ - 1)
    def _():
        q = q_ref[0]                                  # (H, TQ, hd) bf16
        k = k_ref[0]                                  # (H, TK, hd) bf16
        v = v_ref[0]                                  # (H, TK, hd) bf16
        s = jnp.einsum('hqd,hkd->hqk', q, k,
                       preferred_element_type=jnp.float32) * scale   # (H,TQ,TK)
        rowi = lax.broadcasted_iota(jnp.int32, (TQ, TK), 0) + qi * TQ
        coli = lax.broadcasted_iota(jnp.int32, (TQ, TK), 1) + ki * TK
        key_mask = mask_ref[0] > 0.5                  # (1, TK)
        allowed = (coli <= rowi) & key_mask           # (TQ, TK)
        s = jnp.where(allowed[None, :, :], s, NEG_INF)
        m_new = jnp.maximum(m_ref[...], jnp.max(s, axis=-1, keepdims=True))
        alpha = jnp.exp(m_ref[...] - m_new)
        p = jnp.exp(s - m_new)
        l_ref[...] = alpha * l_ref[...] + jnp.sum(p, axis=-1, keepdims=True)
        acc_ref[...] = alpha * acc_ref[...] + jnp.einsum(
            'hqk,hkd->hqd', p.astype(jnp.bfloat16), v,
            preferred_element_type=jnp.float32)
        m_ref[...] = m_new

    @pl.when(ki == n_kv - 1)
    def _():
        x = x_ref[0]                                  # (TQ, D) f32 residual
        denom = jnp.where(l_ref[...] > 0.0, l_ref[...], 1.0)  # fully-masked rows -> 0
        ctx = acc_ref[...] * pl.reciprocal(denom, approx=True)    # (H, TQ, hd) f32
        # Pack head outputs into a flat (TQ, D) bf16 scratch -> one K=D MXU matmul
        # (better contraction utilization than H small K=hd matmuls).
        for hh in range(num_heads):
            ctx_ref[:, hh * hd:(hh + 1) * hd] = ctx[hh].astype(jnp.bfloat16)
        attn = jnp.dot(ctx_ref[...], wo_ref[...],
                       preferred_element_type=jnp.float32) + bo_ref[...]
        x2 = x + attn

        # --- MLP ---
        # TODO(synk): for D>=1280 on v7x, stream w_fc/w_proj along the 4D axis
        # (inner pltpu.emit_pipeline) instead of keeping them fully resident.
        h2 = _layernorm(x2, ln2w_ref[...], ln2b_ref[...]).astype(jnp.bfloat16)
        fc = jnp.dot(h2, wfc_ref[...],
                     preferred_element_type=jnp.float32) + bfc_ref[...]
        g = _gelu_new(fc).astype(jnp.bfloat16)
        mlp = jnp.dot(g, wproj_ref[...],
                      preferred_element_type=jnp.float32) + bproj_ref[...]
        out_ref[0] = x2 + mlp


def attn_mlp_forward(x, q, k, v, key_mask, blk, num_heads, q_tile):
    B, T, D = x.shape
    H = num_heads
    hd = D // H
    kv_tile = q_tile
    grid = (B, T // q_tile, T // kv_tile)
    weights = [blk['w_o'], blk['b_o'], blk['ln2_w'], blk['ln2_b'],
               blk['w_fc'], blk['b_fc'], blk['w_proj'], blk['b_proj']]
    in_specs = [
        pl.BlockSpec((1, q_tile, D), lambda b, qi, ki: (b, qi, 0)),        # x
        pl.BlockSpec((1, H, q_tile, hd), lambda b, qi, ki: (b, 0, qi, 0)),  # q
        pl.BlockSpec((1, H, kv_tile, hd), lambda b, qi, ki: (b, 0, ki, 0)),  # k
        pl.BlockSpec((1, H, kv_tile, hd), lambda b, qi, ki: (b, 0, ki, 0)),  # v
        pl.BlockSpec((1, 1, kv_tile), lambda b, qi, ki: (b, 0, ki)),       # mask
    ] + [_weight_spec(w.shape, 3) for w in weights]
    return pl.pallas_call(
        functools.partial(attn_mlp_kernel, num_heads=H),
        out_shape=jax.ShapeDtypeStruct((B, T, D), jnp.float32),
        grid_spec=pltpu.PrefetchScalarGridSpec(
            num_scalar_prefetch=0, grid=grid,
            in_specs=in_specs,
            out_specs=pl.BlockSpec((1, q_tile, D), lambda b, qi, ki: (b, qi, 0)),
            scratch_shapes=[
                pltpu.VMEM((H, q_tile, 1), jnp.float32),   # m (running max)
                pltpu.VMEM((H, q_tile, 1), jnp.float32),   # l (running denom)
                pltpu.VMEM((H, q_tile, hd), jnp.float32),  # acc
                pltpu.VMEM((q_tile, D), jnp.bfloat16),     # packed head outputs
            ]),
        compiler_params=pltpu.CompilerParams(
            dimension_semantics=("parallel", "parallel", "arbitrary"),
            vmem_limit_bytes=_vmem_limit_bytes()),
    )(x, q, k, v, key_mask, *weights)


def gpt2_block_forward(x, key_mask, blk, num_heads, q_tile):
    """One GPT-2 transformer block (two fused Pallas kernels, no XLA relayout)."""
    q, k, v = ln_qkv_forward(x, blk['ln1_w'], blk['ln1_b'],
                             blk['w_qkv'], blk['b_qkv'], num_heads, q_tile)
    return attn_mlp_forward(x, q, k, v, key_mask, blk, num_heads, q_tile)


# ----------------------------------------------------------------------------
# Kernel 3: final LN + tied lm_head, grid (batch, T-tile, vocab-tile) with an
# online log-sum-exp / label-logit accumulator; LN hoisted to a per-T-tile
# bf16 scratch; logits written in bf16.
# ----------------------------------------------------------------------------
def lm_head_kernel(x_ref, labels_ref, lnfw_ref, lnfb_ref, wte_ref,
                   logits_ref, nll_ref, m_ref, l_ref, ll_ref, h_ref,
                   *, v_real, v_tile):
    vi = pl.program_id(2)

    @pl.when(vi == 0)
    def _():
        m_ref[...] = jnp.full(m_ref.shape, NEG_INF, dtype=m_ref.dtype)
        l_ref[...] = jnp.zeros(l_ref.shape, l_ref.dtype)
        ll_ref[...] = jnp.zeros(ll_ref.shape, ll_ref.dtype)
        # LN + bf16 cast computed once per (batch, T-tile), reused for all vocab tiles.
        h_ref[...] = _layernorm(x_ref[0], lnfw_ref[...],
                                lnfb_ref[...]).astype(jnp.bfloat16)

    h = h_ref[...]                                                   # (TT, D) bf16
    # logits tile = h @ wte_tile^T (tied embeddings), bf16 in / f32 accumulate.
    logits = lax.dot_general(h, wte_ref[...], (((1,), (1,)), ((), ())),
                             preferred_element_type=jnp.float32)     # (TT, TV)
    logits_ref[0] = logits.astype(jnp.bfloat16)                      # bf16 writeback

    TT = logits.shape[0]
    col = vi * v_tile + lax.broadcasted_iota(jnp.int32, (TT, v_tile), 1)
    valid = col < v_real                           # mask padded vocab columns
    masked = jnp.where(valid, logits, NEG_INF)

    lab = labels_ref[0]                                              # (TT, 1) i32
    # Safe because labels are always < v_real (no -100 sentinel reaches the kernel).
    ll_ref[...] += jnp.sum(jnp.where(col == lab, logits, 0.0),
                           axis=-1, keepdims=True)

    tile_max = jnp.max(masked, axis=-1, keepdims=True)
    m_new = jnp.maximum(m_ref[...], tile_max)
    alpha = jnp.exp(m_ref[...] - m_new)
    l_ref[...] = alpha * l_ref[...] + jnp.sum(jnp.exp(masked - m_new),
                                              axis=-1, keepdims=True)
    m_ref[...] = m_new

    @pl.when(vi == pl.num_programs(2) - 1)
    def _():
        nll_ref[0] = (m_ref[...] + jnp.log(l_ref[...])) - ll_ref[...]


def gpt2_lm_head_forward(x, shifted_labels, lnf_w, lnf_b, wte_pad_bf16,
                         t_tile, v_tile, v_real):
    B, T, D = x.shape
    Vp = wte_pad_bf16.shape[0]
    grid = (B, T // t_tile, Vp // v_tile)
    in_specs = [
        pl.BlockSpec((1, t_tile, D), lambda b, ti, vi: (b, ti, 0)),
        pl.BlockSpec((1, t_tile, 1), lambda b, ti, vi: (b, ti, 0)),
        _weight_spec(lnf_w.shape, 3), _weight_spec(lnf_b.shape, 3),
        pl.BlockSpec((v_tile, D), lambda b, ti, vi: (vi, 0)),
    ]
    out_shape = (jax.ShapeDtypeStruct((B, T, Vp), jnp.bfloat16),
                 jax.ShapeDtypeStruct((B, T, 1), jnp.float32))
    out_specs = (pl.BlockSpec((1, t_tile, v_tile), lambda b, ti, vi: (b, ti, vi)),
                 pl.BlockSpec((1, t_tile, 1), lambda b, ti, vi: (b, ti, 0)))
    # TODO(synk): add a loss-only mode that drops the logits output entirely for
    # training steps where logits are never read (removes the whole writeback).
    return pl.pallas_call(
        functools.partial(lm_head_kernel, v_real=v_real, v_tile=v_tile),
        out_shape=out_shape,
        grid_spec=pltpu.PrefetchScalarGridSpec(
            num_scalar_prefetch=0, grid=grid,
            in_specs=in_specs, out_specs=out_specs,
            scratch_shapes=[pltpu.VMEM((t_tile, 1), jnp.float32)] * 3
                           + [pltpu.VMEM((t_tile, D), jnp.bfloat16)]),
        compiler_params=pltpu.CompilerParams(
            dimension_semantics=("parallel", "parallel", "arbitrary"),
            vmem_limit_bytes=_vmem_limit_bytes()),
    )(x, shifted_labels, lnf_w, lnf_b, wte_pad_bf16)


# ----------------------------------------------------------------------------
# Full forward (== GPT2LMHeadModel.forward(input_ids, attention_mask, labels)).
# ----------------------------------------------------------------------------
def gpt2_forward(params, input_ids, attention_mask):
    B, T = input_ids.shape
    num_heads = params['num_heads']
    V = params['vocab_size']

    # Tile selection with a T-padding guard: never fall back to q_tile=T for a
    # long non-128-multiple sequence (keeps blocks bounded & lane/sublane aligned).
    if T <= 128:
        T_pad, q_tile = T, T
    else:
        T_pad = ((T + 127) // 128) * 128
        q_tile = 128
        # TODO(synk): raise q_tile to 256 on v5e/v6e (128 MiB VMEM); keep 128 on v7x.

    if T_pad != T:
        pad = T_pad - T
        ids_p = jnp.pad(input_ids, ((0, 0), (0, pad)))
        mask_p = jnp.pad(attention_mask, ((0, 0), (0, pad)))
    else:
        ids_p, mask_p = input_ids, attention_mask

    # Embedding gathers are glue (dynamic gather stays in plain JAX).
    pos = jnp.minimum(jnp.arange(T_pad), params['wpe'].shape[0] - 1)
    x = (params['wte'][ids_p] + params['wpe'][pos][None, :, :]).astype(jnp.float32)
    key_mask = mask_p.astype(jnp.float32).reshape(B, 1, T_pad)

    # TODO(synk): stack per-layer weights on a leading L axis and fold this loop
    # into the grid (or use cross-call weight-prefetch futures) to hide per-layer
    # weight DMA behind MXU work.
    for blk in params['blocks']:
        x = gpt2_block_forward(x, key_mask, blk, num_heads, q_tile)

    # labels == input_ids (as in get_loss); shift for next-token prediction.
    shifted = jnp.concatenate(
        [ids_p[:, 1:], jnp.zeros((B, 1), ids_p.dtype)], axis=1
    ).astype(jnp.int32)[..., None]                                   # (B, T_pad, 1)

    logits_p, nll = gpt2_lm_head_forward(
        x, shifted, params['lnf_w'], params['lnf_b'], params['wte_lm_bf16'],
        t_tile=q_tile, v_tile=params['lm_v_tile'], v_real=V)
    nll = nll[..., 0]                                                # (B, T_pad)

    # Shifted CE; positions whose label token is padding are excluded from the
    # mean (with an all-ones mask this equals the plain mean over B*(T-1)).
    valid = attention_mask[:, 1:].astype(jnp.float32)                # (B, T-1)
    loss = jnp.sum(nll[:, :T - 1] * valid) / jnp.maximum(jnp.sum(valid), 1.0)

    # Logits stay bf16 (halved writeback / slice traffic); cast to f32 downstream
    # only if strict HF logit parity is required.
    logits = logits_p[:, :T, :V]
    return logits, loss


def init_gpt2_params(key, vocab, d_model, n_layer, n_head, max_pos):
    keys = jax.random.split(key, 2 + n_layer)
    f32, bf16 = jnp.float32, jnp.bfloat16
    params = {
        'num_heads': n_head,
        'vocab_size': vocab,
        # wte kept f32 for the embedding gather.
        'wte': 0.02 * jax.random.normal(keys[0], (vocab, d_model), f32),
        'wpe': 0.01 * jax.random.normal(keys[1], (max_pos, d_model), f32),
        'lnf_w': jnp.ones((1, d_model), f32),
        'lnf_b': jnp.zeros((1, d_model), f32),
        'blocks': [],
    }
    # Lane-dense vocab tile; precompute the padded bf16 tied-embedding matrix ONCE
    # (perf-review item: no per-forward cast+pad HBM pass).
    tv = 128 if vocab <= 1024 else 512   # use 1024 on v5e/v6e, keep <=512 on v7x
    vp = ((vocab + tv - 1) // tv) * tv
    params['lm_v_tile'] = tv
    params['wte_lm_bf16'] = jnp.pad(params['wte'].astype(bf16),
                                    ((0, vp - vocab), (0, 0)))
    for l in range(n_layer):
        ks = jax.random.split(keys[2 + l], 4)
        params['blocks'].append({
            'ln1_w': jnp.ones((1, d_model), f32),
            'ln1_b': jnp.zeros((1, d_model), f32),
            'w_qkv': (0.02 * jax.random.normal(ks[0], (d_model, 3 * d_model), f32)).astype(bf16),
            'b_qkv': jnp.zeros((1, 3 * d_model), f32),
            'w_o': (0.02 * jax.random.normal(ks[1], (d_model, d_model), f32)).astype(bf16),
            'b_o': jnp.zeros((1, d_model), f32),
            'ln2_w': jnp.ones((1, d_model), f32),
            'ln2_b': jnp.zeros((1, d_model), f32),
            'w_fc': (0.02 * jax.random.normal(ks[2], (d_model, 4 * d_model), f32)).astype(bf16),
            'b_fc': jnp.zeros((1, 4 * d_model), f32),
            'w_proj': (0.02 * jax.random.normal(ks[3], (4 * d_model, d_model), f32)).astype(bf16),
            'b_proj': jnp.zeros((1, d_model), f32),
        })
    return params


if __name__ == "__main__":
    # Small synthetic GPT-2 config. VOCAB=200 is deliberately not a 128-multiple
    # so the vocab-padding / masking path of the lm_head kernel is exercised
    # (2 vocab tiles of 128, last one partially padded).
    B, T = 2, 8
    VOCAB, D_MODEL, N_LAYER, N_HEAD, MAX_POS = 200, 32, 2, 2, 64

    key = jax.random.PRNGKey(0)
    pkey, ikey = jax.random.split(key)
    params = init_gpt2_params(pkey, VOCAB, D_MODEL, N_LAYER, N_HEAD, MAX_POS)

    input_ids = jax.random.randint(ikey, (B, T), 0, VOCAB, dtype=jnp.int32)
    attention_mask = jnp.ones((B, T), jnp.int32)   # no padding in this batch

    # TODO(synk): tokenizer / text-prep / generation methods (encode/decode/
    # generate/prepare_inputs) have no Pallas equivalent; only the tensor forward
    # pass (loss + logits) is kernelized.
    logits, loss = gpt2_forward(params, input_ids, attention_mask)
    jax.block_until_ready((logits, loss))

    assert logits.shape == (B, T, VOCAB)
    assert loss.shape == ()
    assert bool(jnp.isfinite(loss))
    print("KERNEL_OK")
</pallas_src>

<mosaic_0001>
module attributes {stable_mosaic.version = 11 : i64} {
  func.func @_probe(%arg0: i32, %arg1: memref<8x128xf32, #tpu.memory_space<vmem>>, %arg2: memref<8x128xf32, #tpu.memory_space<vmem>>) attributes {dimension_semantics = [#tpu.dimension_semantics<arbitrary>], iteration_bounds = array<i64: 2>, scalar_prefetch = 0 : i64, scratch_operands = 0 : i64, tpu.core_type = #tpu.core_type<tc>, window_params = [{pipeline_mode = #tpu.pipeline_mode<synchronous>, transform_indices = @transform_0, window_bounds = array<i64: 8, 128>}, {pipeline_mode = #tpu.pipeline_mode<synchronous>, transform_indices = @transform_1, window_bounds = array<i64: 8, 128>}]} {
    %c0 = arith.constant 0 : index
    %c0_0 = arith.constant 0 : index
    %0 = vector.load %arg1[%c0, %c0_0] : memref<8x128xf32, #tpu.memory_space<vmem>>, vector<8x128xf32>
    %cst = arith.constant 1.000000e+00 : f32
    %1 = vector.broadcast %cst : f32 to vector<8x128xf32>
    %2 = arith.addf %0, %1 : vector<8x128xf32>
    %c0_1 = arith.constant 0 : index
    %c0_2 = arith.constant 0 : index
    %3 = vector.load %arg2[%c0_1, %c0_2] : memref<8x128xf32, #tpu.memory_space<vmem>>, vector<8x128xf32>
    tpu.vector_store %arg2[%c0_1, %c0_2], %2 {strides = array<i32>} : memref<8x128xf32, #tpu.memory_space<vmem>>, vector<8x128xf32>,
    return
  }
  func.func @transform_0(%arg0: i32) -> (i32, i32) {
    %c0_i32 = arith.constant 0 : i32
    %c0_i32_0 = arith.constant 0 : i32
    %c0_i32_1 = arith.constant 0 : i32
    return %c0_i32, %c0_i32_0 : i32, i32
  }
  func.func @transform_1(%arg0: i32) -> (i32, i32) {
    %c0_i32 = arith.constant 0 : i32
    %c0_i32_0 = arith.constant 0 : i32
    %c0_i32_1 = arith.constant 0 : i32
    return %c0_i32, %c0_i32_0 : i32, i32
  }
}

module attributes {stable_mosaic.version = 11 : i64} {
  func.func @ln_qkv_kernel(%arg0: i32, %arg1: i32, %arg2: memref<1x8x32xf32, #tpu.memory_space<vmem>>, %arg3: memref<1x32xf32, #tpu.memory_space<vmem>>, %arg4: memref<1x32xf32, #tpu.memory_space<vmem>>, %arg5: memref<32x96xbf16, #tpu.memory_space<vmem>>, %arg6: memref<1x96xf32, #tpu.memory_space<vmem>>, %arg7: memref<1x2x8x16xbf16, #tpu.memory_space<vmem>>, %arg8: memref<1x2x8x16xbf16, #tpu.memory_space<vmem>>, %arg9: memref<1x2x8x16xbf16, #tpu.memory_space<vmem>>) attributes {dimension_semantics = [#tpu.dimension_semantics<parallel>, #tpu.dimension_semantics<parallel>], iteration_bounds = array<i64: 2, 1>, scalar_prefetch = 0 : i64, scratch_operands = 0 : i64, tpu.core_type = #tpu.core_type<tc>, window_params = [{transform_indices = @transform_0, window_bounds = array<i64: 1, 8, 32>}, {pipeline_mode = #tpu.pipeline_mode<synchronous>, transform_indices = @transform_1, window_bounds = array<i64: 1, 32>}, {pipeline_mode = #tpu.pipeline_mode<synchronous>, transform_indices = @transform_2, window_bounds = array<i64: 1, 32>}, {pipeline_mode = #tpu.pipeline_mode<synchronous>, transform_indices = @transform_3, window_bounds = array<i64: 32, 96>}, {pipeline_mode = #tpu.pipeline_mode<synchronous>, transform_indices = @transform_4, window_bounds = array<i64: 1, 96>}, {transform_indices = @transform_5, window_bounds = array<i64: 1, 2, 8, 16>}, {transform_indices = @transform_6, window_bounds = array<i64: 1, 2, 8, 16>}, {transform_indices = @transform_7, window_bounds = array<i64: 1, 2, 8, 16>}]} {
    %c0 = arith.constant 0 : index
    %c0_0 = arith.constant 0 : index
    %c0_1 = arith.constant 0 : index
    %0 = vector.load %arg2[%c0, %c0_0, %c0_1] : memref<1x8x32xf32, #tpu.memory_space<vmem>>, vector<1x8x32xf32>
    %1 = vector.shape_cast %0 : vector<1x8x32xf32> to vector<8x32xf32>
    %c0_2 = arith.constant 0 : index
    %c0_3 = arith.constant 0 : index
    %2 = vector.load %arg3[%c0_2, %c0_3] : memref<1x32xf32, #tpu.memory_space<vmem>>, vector<1x32xf32>
    %c0_4 = arith.constant 0 : index
    %c0_5 = arith.constant 0 : index
    %3 = vector.load %arg4[%c0_4, %c0_5] : memref<1x32xf32, #tpu.memory_space<vmem>>, vector<1x32xf32>
    %cst = arith.constant dense<0.000000e+00> : vector<8xf32>
    %4 = vector.multi_reduction <add>, %1, %cst [1] : vector<8x32xf32> to vector<8xf32>
    %5 = vector.shape_cast %4 : vector<8xf32> to vector<8x1xf32>
    %cst_6 = arith.constant 3.200000e+01 : f32
    %6 = vector.broadcast %cst_6 : f32 to vector<8x1xf32>
    %7 = arith.divf %5, %6 : vector<8x1xf32>
    %8 = vector.broadcast %7 : vector<8x1xf32> to vector<8x32xf32>
    %9 = arith.subf %1, %8 : vector<8x32xf32>
    %10 = arith.mulf %9, %9 : vector<8x32xf32>
    %cst_7 = arith.constant dense<0.000000e+00> : vector<8xf32>
    %11 = vector.multi_reduction <add>, %10, %cst_7 [1] : vector<8x32xf32> to vector<8xf32>
    %12 = vector.shape_cast %11 : vector<8xf32> to vector<8x1xf32>
    %cst_8 = arith.constant 3.200000e+01 : f32
    %13 = vector.broadcast %cst_8 : f32 to vector<8x1xf32>
    %14 = arith.divf %12, %13 : vector<8x1xf32>
    %15 = vector.broadcast %7 : vector<8x1xf32> to vector<8x32xf32>
    %16 = arith.subf %1, %15 : vector<8x32xf32>
    %cst_9 = arith.constant 9.99999974E-6 : f32
    %17 = vector.broadcast %cst_9 : f32 to vector<8x1xf32>
    %18 = arith.addf %14, %17 : vector<8x1xf32>
    %19 = math.rsqrt %18 : vector<8x1xf32>
    %20 = vector.broadcast %19 : vector<8x1xf32> to vector<8x32xf32>
    %21 = arith.mulf %16, %20 : vector<8x32xf32>
    %22 = vector.broadcast %2 : vector<1x32xf32> to vector<8x32xf32>
    %23 = arith.mulf %21, %22 : vector<8x32xf32>
    %24 = vector.broadcast %3 : vector<1x32xf32> to vector<8x32xf32>
    %25 = arith.addf %23, %24 : vector<8x32xf32>
    %26 = arith.truncf %25 : vector<8x32xf32> to vector<8x32xbf16>
    %c0_10 = arith.constant 0 : index
    %c0_11 = arith.constant 0 : index
    %27 = vector.load %arg5[%c0_10, %c0_11] : memref<32x96xbf16, #tpu.memory_space<vmem>>, vector<32x96xbf16>
    %cst_12 = arith.constant dense<0.000000e+00> : vector<8x96xf32>
    %28 = tpu.matmul %26, %27, %cst_12 {dimension_numbers = #tpu.dot_dimension_numbers<[1], [0], [0], [1], [0, 0, 1, 1], [], []>} : vector<8x32xbf16>, vector<32x96xbf16>, vector<8x96xf32> -> vector<8x96xf32>
    %c0_13 = arith.constant 0 : index
    %c0_14 = arith.constant 0 : index
    %29 = vector.load %arg6[%c0_13, %c0_14] : memref<1x96xf32, #tpu.memory_space<vmem>>, vector<1x96xf32>
    %30 = vector.broadcast %29 : vector<1x96xf32> to vector<8x96xf32>
    %31 = arith.addf %28, %30 : vector<8x96xf32>
    %32 = arith.truncf %31 : vector<8x96xf32> to vector<8x96xbf16>
    %33 = vector.extract_strided_slice %32 {offsets = [0, 0], sizes = [8, 16], strides = [1, 1]} : vector<8x96xbf16> to vector<8x16xbf16>
    %c0_15 = arith.constant 0 : index
    %c0_16 = arith.constant 0 : index
    %c0_17 = arith.constant 0 : index
    %c0_18 = arith.constant 0 : index
    %34 = vector.load %arg7[%c0_15, %c0_16, %c0_17, %c0_18] : memref<1x2x8x16xbf16, #tpu.memory_space<vmem>>, vector<1x1x8x16xbf16>
    %35 = vector.shape_cast %34 : vector<1x1x8x16xbf16> to vector<8x16xbf16>
    %36 = vector.shape_cast %33 : vector<8x16xbf16> to vector<1x1x8x16xbf16>
    tpu.vector_store %arg7[%c0_15, %c0_16, %c0_17, %c0_18], %36 {strides = array<i32>} : memref<1x2x8x16xbf16, #tpu.memory_space<vmem>>, vector<1x1x8x16xbf16>,
    %37 = vector.extract_strided_slice %32 {offsets = [0, 32], sizes = [8, 16], strides = [1, 1]} : vector<8x96xbf16> to vector<8x16xbf16>
    %c0_19 = arith.constant 0 : index
    %c0_20 = arith.constant 0 : index
    %c0_21 = arith.constant 0 : index
    %c0_22 = arith.constant 0 : index
    %38 = vector.load %arg8[%c0_19, %c0_20, %c0_21, %c0_22] : memref<1x2x8x16xbf16, #tpu.memory_space<vmem>>, vector<1x1x8x16xbf16>
    %39 = vector.shape_cast %38 : vector<1x1x8x16xbf16> to vector<8x16xbf16>
    %40 = vector.shape_cast %37 : vector<8x16xbf16> to vector<1x1x8x16xbf16>
    tpu.vector_store %arg8[%c0_19, %c0_20, %c0_21, %c0_22], %40 {strides = array<i32>} : memref<1x2x8x16xbf16, #tpu.memory_space<vmem>>, vector<1x1x8x16xbf16>,
    %41 = vector.extract_strided_slice %32 {offsets = [0, 64], sizes = [8, 16], strides = [1, 1]} : vector<8x96xbf16> to vector<8x16xbf16>
    %c0_23 = arith.constant 0 : index
    %c0_24 = arith.constant 0 : index
    %c0_25 = arith.constant 0 : index
    %c0_26 = arith.constant 0 : index
    %42 = vector.load %arg9[%c0_23, %c0_24, %c0_25, %c0_26] : memref<1x2x8x16xbf16, #tpu.memory_space<vmem>>, vector<1x1x8x16xbf16>
    %43 = vector.shape_cast %42 : vector<1x1x8x16xbf16> to vector<8x16xbf16>
    %44 = vector.shape_cast %41 : vector<8x16xbf16> to vector<1x1x8x16xbf16>
    tpu.vector_store %arg9[%c0_23, %c0_24, %c0_25, %c0_26], %44 {strides = array<i32>} : memref<1x2x8x16xbf16, #tpu.memory_space<vmem>>, vector<1x1x8x16xbf16>,
    %45 = vector.extract_strided_slice %32 {offsets = [0, 16], sizes = [8, 16], strides = [1, 1]} : vector<8x96xbf16> to vector<8x16xbf16>
    %c0_27 = arith.constant 0 : index
    %c1 = arith.constant 1 : index
    %c0_28 = arith.constant 0 : index
    %c0_29 = arith.constant 0 : index
    %46 = vector.load %arg7[%c0_27, %c1, %c0_28, %c0_29] : memref<1x2x8x16xbf16, #tpu.memory_space<vmem>>, vector<1x1x8x16xbf16>
    %47 = vector.shape_cast %46 : vector<1x1x8x16xbf16> to vector<8x16xbf16>
    %48 = vector.shape_cast %45 : vector<8x16xbf16> to vector<1x1x8x16xbf16>
    tpu.vector_store %arg7[%c0_27, %c1, %c0_28, %c0_29], %48 {strides = array<i32>} : memref<1x2x8x16xbf16, #tpu.memory_space<vmem>>, vector<1x1x8x16xbf16>,
    %49 = vector.extract_strided_slice %32 {offsets = [0, 48], sizes = [8, 16], strides = [1, 1]} : vector<8x96xbf16> to vector<8x16xbf16>
    %c0_30 = arith.constant 0 : index
    %c1_31 = arith.constant 1 : index
    %c0_32 = arith.constant 0 : index
    %c0_33 = arith.constant 0 : index
    %50 = vector.load %arg8[%c0_30, %c1_31, %c0_32, %c0_33] : memref<1x2x8x16xbf16, #tpu.memory_space<vmem>>, vector<1x1x8x16xbf16>
    %51 = vector.shape_cast %50 : vector<1x1x8x16xbf16> to vector<8x16xbf16>
    %52 = vector.shape_cast %49 : vector<8x16xbf16> to vector<1x1x8x16xbf16>
    tpu.vector_store %arg8[%c0_30, %c1_31, %c0_32, %c0_33], %52 {strides = array<i32>} : memref<1x2x8x16xbf16, #tpu.memory_space<vmem>>, vector<1x1x8x16xbf16>,
    %53 = vector.extract_strided_slice %32 {offsets = [0, 80], sizes = [8, 16], strides = [1, 1]} : vector<8x96xbf16> to vector<8x16xbf16>
    %c0_34 = arith.constant 0 : index
    %c1_35 = arith.constant 1 : index
    %c0_36 = arith.constant 0 : index
    %c0_37 = arith.constant 0 : index
    %54 = vector.load %arg9[%c0_34, %c1_35, %c0_36, %c0_37] : memref<1x2x8x16xbf16, #tpu.memory_space<vmem>>, vector<1x1x8x16xbf16>
    %55 = vector.shape_cast %54 : vector<1x1x8x16xbf16> to vector<8x16xbf16>
    %56 = vector.shape_cast %53 : vector<8x16xbf16> to vector<1x1x8x16xbf16>
    tpu.vector_store %arg9[%c0_34, %c1_35, %c0_36, %c0_37], %56 {strides = array<i32>} : memref<1x2x8x16xbf16, #tpu.memory_space<vmem>>, vector<1x1x8x16xbf16>,
    return
  }
  func.func @transform_0(%arg0: i32, %arg1: i32) -> (i32, i32, i32) {
    %c0_i32 = arith.constant 0 : i32
    %c0_i32_0 = arith.constant 0 : i32
    return %arg0, %arg1, %c0_i32 : i32, i32, i32
  }
  func.func @transform_1(%arg0: i32, %arg1: i32) -> (i32, i32) {
    %c0_i32 = arith.constant 0 : i32
    %c0_i32_0 = arith.constant 0 : i32
    %c0_i32_1 = arith.constant 0 : i32
    return %c0_i32, %c0_i32_0 : i32, i32
  }
  func.func @transform_2(%arg0: i32, %arg1: i32) -> (i32, i32) {
    %c0_i32 = arith.constant 0 : i32
    %c0_i32_0 = arith.constant 0 : i32
    %c0_i32_1 = arith.constant 0 : i32
    return %c0_i32, %c0_i32_0 : i32, i32
  }
  func.func @transform_3(%arg0: i32, %arg1: i32) -> (i32, i32) {
    %c0_i32 = arith.constant 0 : i32
    %c0_i32_0 = arith.constant 0 : i32
    %c0_i32_1 = arith.constant 0 : i32
    return %c0_i32, %c0_i32_0 : i32, i32
  }
  func.func @transform_4(%arg0: i32, %arg1: i32) -> (i32, i32) {
    %c0_i32 = arith.constant 0 : i32
    %c0_i32_0 = arith.constant 0 : i32
    %c0_i32_1 = arith.constant 0 : i32
    return %c0_i32, %c0_i32_0 : i32, i32
  }
  func.func @transform_5(%arg0: i32, %arg1: i32) -> (i32, i32, i32, i32) {
    %c0_i32 = arith.constant 0 : i32
    %c0_i32_0 = arith.constant 0 : i32
    %c0_i32_1 = arith.constant 0 : i32
    return %arg0, %c0_i32, %arg1, %c0_i32_0 : i32, i32, i32, i32
  }
  func.func @transform_6(%arg0: i32, %arg1: i32) -> (i32, i32, i32, i32) {
    %c0_i32 = arith.constant 0 : i32
    %c0_i32_0 = arith.constant 0 : i32
    %c0_i32_1 = arith.constant 0 : i32
    return %arg0, %c0_i32, %arg1, %c0_i32_0 : i32, i32, i32, i32
  }
  func.func @transform_7(%arg0: i32, %arg1: i32) -> (i32, i32, i32, i32) {
    %c0_i32 = arith.constant 0 : i32
    %c0_i32_0 = arith.constant 0 : i32
    %c0_i32_1 = arith.constant 0 : i32
    return %arg0, %c0_i32, %arg1, %c0_i32_0 : i32, i32, i32, i32
  }
}

</mosaic_0001>

<bundles_post_ra>
// kernel: tpu_custom_call.1
= control target key start
LH: loop header
LB: loop body
LE: loop exit
PB: predicated region body
PF: predicated region fallthrough
CT: control target
= control target key end

     0   :  { %6 = vsyncpa [#allocation3], 0  ;;  %s287_s0 = inlined_call_operand.hbm [shape: f32[8,128], index: 0, kind: input, shape index: {}]   ;;  %s288_s1 = inlined_call_operand.hbm [shape: f32[8,128], index: 1, kind: output, shape index: {}]  }
   0x1   :  { %7 = vsyncpa [#allocation4], 0  ;;  %s270_s6 = smov 0  }
   0x2 LB: > { %s149_s7 = sadd.s32 4294967295, %s256_s6   ;;  %p150_p0 = scmp.ge.s32.totalorder %s256_s6, 1  ;;  %s256_s6 = sphi %s270_s6, %s13_s6  }
   0x3   : > { %p60_p1 = scmp.lt.s32.totalorder %s256_s6, 3  ;;  %s72_s10 = sshll.u32 %s287_s0, 4  ;;  %s73_s10 = int_to_ptr.hbm [resolvable:$true] %s72_s10 }
   0x4   : > { %p170_p3 = scmp.eq.s32.totalorder %s149_s7, 0  ;;  %s258_s11 = smov [#allocation2]  }
   0x5   : > { %p61_p2 = pnand %p150_p0, %p60_p1  ;;  %s74_s12 = sshll.u32 %s258_s11, 4  ;;  %s75_s12 = int_to_ptr.vmem [resolvable:$true] %s74_s12 }
   0x7   : > { %p166_p4 = pneg %p61_p2  ;;  %87 = sbr.rel (%p61_p2) target bundleno = 20 (0x14), region = 24 }
   0x9   : > { %p167_p5 = pnand %p170_p3, %p166_p4 }
   0xb   : > { %169 = dma.hbm_to_vmem [thread:$0]  (!%p167_p5), %s73_s10, 128, %s75_s12, [#allocation3]  }
   0xc   : > { %247 = dma.done.wait (%p170_p3), [#allocation3], 128  }
   0xd   : > { %249 = vsyncadd (%p170_p3), [#allocation3], 4294967168  ;;  %s259_s13 = smov [#allocation5]   ;;  %s109_s17 = sshll.u32 %s288_s1, 4  ;;  %v98_v0 = vld [vmem:[#allocation2] sm:$0xff]  ;;  %s110_s17 = int_to_ptr.hbm [resolvable:$true] %s109_s17 }
   0xe   : > { %s107_s14 = sshll.u32 %s259_s13, 4  ;;  %p172_p6 = scmp.eq.s32.totalorder %s149_s7, 1  ;;  %v99_v1 = vadd.f32 1.0, %v98_v0  ;;  %s108_s14 = int_to_ptr.vmem [resolvable:$true] %s107_s14 }
  0x10   : > { %100 = vst [vmem:[#allocation5] sm:$0xff] %v99_v1 }
  0x11   : > { %163 = dma.vmem_to_hbm [thread:$0]  (%p172_p6), %s108_s14, 128, %s110_s17, [#allocation4]  }
  0x12   : > { %251 = dma.done.wait (%p172_p6), [#allocation4], 128  }
  0x13   : > { %253 = vsyncadd (%p172_p6), [#allocation4], 4294967168 }
  0x14 PF: > { %s13_s6 = sadd.s32 1, %s256_s6  }
  0x15   : > { %p10_p7 = scmp.ge.s32.totalorder %s13_s6, 4  }
  0x17   :  { %12 = sbr.rel (!%p10_p7) target bundleno = 2 (0x2), region = 53 }
  0x1c   :  { %123 = vsyncpa [#allocation3], 1 }
  0x1d   :  { %125 = vsyncpa [#allocation3 + $0x1], 1 }
  0x1e   :  { %126 = vsyncpa [#allocation4], 1 }
  0x1f   :  { %128 = vsyncpa [#allocation4 + $0x1], 1 }

// kernel: tpu_custom_call.1
= control target key start
LH: loop header
LB: loop body
LE: loop exit
PB: predicated region body
PF: predicated region fallthrough
CT: control target
= control target key end

     0   :  { %s1374_s0 = inlined_call_operand.hbm [shape: f32[2,8,32], index: 0, kind: input, shape index: {}]   ;;  %s1375_s1 = inlined_call_operand.hbm [shape: f32[1,32], index: 1, kind: input, shape index: {}]   ;;  %s1376_s2 = inlined_call_operand.vmem [shape: f32[1,32], index: 2, kind: input, shape index: {}]   ;;  %s1377_s3 = inlined_call_operand.hbm [shape: bf16[32,96], index: 3, kind: input, shape index: {}]   ;;  %s1378_s4 = inlined_call_operand.vmem [shape: f32[1,96], index: 4, kind: input, shape index: {}]   ;;  %s1379_s5 = inlined_call_operand.hbm [shape: bf16[2,2,8,16], index: 5, kind: output, shape index: {0}]   ;;  %s1380_s6 = inlined_call_operand.hbm [shape: bf16[2,2,8,16], index: 6, kind: output, shape index: {1}]   ;;  %s1381_s7 = inlined_call_operand.hbm [shape: bf16[2,2,8,16], index: 7, kind: output, shape index: {2}]  }
   0x1   :  { %1385 = sst [smem:[#allocation16_spill]] %s1374_s0 }
   0x2   :  { %1386 = sst [smem:[#allocation17_spill]] %s1375_s1 }
   0x3   :  { %1387 = sst [smem:[#allocation18_spill]] %s1376_s2 }
   0x4   :  { %1388 = sst [smem:[#allocation19_spill]] %s1377_s3 }
   0x5   :  { %1389 = sst [smem:[#allocation20_spill]] %s1378_s4 }
   0x6   :  { %13 = vsyncpa [#allocation3], 0 }
   0x7   :  { %15 = vsyncpa [#allocation3 + $0x1], 0 }
   0x8   :  { %16 = vsyncpa [#allocation6], 0 }
   0x9   :  { %17 = vsyncpa [#allocation4], 0 }
   0xa   :  { %19 = vsyncpa [#allocation4 + $0x1], 0 }
   0xb   :  { %20 = vsyncpa [#allocation10], 0 }
   0xc   :  { %22 = vsyncpa [#allocation10 + $0x1], 0  ;;  %s1146_s24 = smov 0   ;;  %s1148_s25 = smov 0  }
   0xd   :  { %s1150_s26 = smov 0   ;;  %s1152_s27 = smov 0  }
   0xe   :  { %s1154_s28 = smov 0   ;;  %s1156_s29 = smov 0  }
   0xf LB: > { %s1177_s30 = sadd.s32 4294967295, %s1093_s29   ;;  %s1382_s8 = sadd.s32 4294967294, %s1093_s29   ;;  %s1093_s29 = sphi %s1156_s29, %s28_s29   ;;  %s1089_s28 = sphi %s1154_s28, %s1405_s28   ;;  %s1085_s27 = sphi %s1152_s27, %s1404_s27   ;;  %s1081_s26 = sphi %s1150_s26, %s1403_s26   ;;  %s1077_s25 = sphi %s1148_s25, %s1402_s25   ;;  %s1073_s24 = sphi %s1146_s24, %s1401_s24  }
  0x10   : > { %p62_p0 = scmp.ne.s32.totalorder %s1077_s25, %s1073_s24  ;;  %p63_p1 = scmp.eq.s32.totalorder %s1177_s30, 0 }
  0x11   : > { %p178_p2 = scmp.eq.s32.totalorder %s1382_s8, 1  ;;  %p707_p4 = scmp.ge.s32.totalorder %s1093_s29, 1 }
  0x12   : > { %p1187_p3 = por %p63_p1, %p62_p0  ;;  %p241_p6 = scmp.lt.s32.totalorder %s1093_s29, 3 }
  0x13   : > { %p1192_p5 = por %p178_p2, %p62_p0  ;;  %s1392_s1 = sld [smem:[#allocation17_spill]] }
  0x14   : > { %p1200_p7 = pnand %p707_p4, %p241_p6  ;;  %p710_p8 = scmp.ge.s32.totalorder %s1093_s29, 2 }
  0x15   : > { %s1095_s15 = smov [#allocation5]   ;;  %s1394_s3 = sld [smem:[#allocation19_spill]] }
  0x16   : > { %p764_p9 = pneg %p1200_p7  ;;  %s255_s16 = sshll.u32 %s1095_s15, 4  ;;  %s256_s16 = int_to_ptr.vmem [resolvable:$true] %s255_s16 }
  0x17   : > { %s1096_s20 = smov [#allocation7]   ;;  %s1097_s22 = smov 64  }
  0x18   : > { %p765_p10 = pnand %p764_p9, %p63_p1  ;;  %s269_s21 = sshll.u32 %s1096_s20, 4  ;;  %s270_s21 = int_to_ptr.vmem [resolvable:$true] %s269_s21 }
  0x19   : > { %s253_s13 = sshll.u32 %s1392_s1, 4  ;;  %s1098_s23 = smov 4   ;;  %s254_s13 = int_to_ptr.hbm [resolvable:$true] %s253_s13 }
  0x1a   : > { %767 = dma.hbm_to_vmem [thread:$0]  (!%p765_p10), %s254_s13, 16, %s256_s16, [#allocation6]  }
  0x1b   : > { %s267_s19 = sshll.u32 %s1394_s3, 4  ;;  %p172_p11 = scmp.eq.s32.totalorder %s1177_s30, 1  ;;  %s268_s19 = int_to_ptr.hbm [resolvable:$true] %s267_s19 }
  0x1c   : > { %770 = dma.hbm_to_vmem [thread:$0]  (!%p765_p10), %s268_s19, 256, %s270_s21, [#allocation6], %s1097_s22, %s1097_s22, %s1098_s23  }
  0x1d   : > { %s40_s11 = sadd.s32 1, %s1089_s28  ;;  %s49_s12 = sadd.s32 1, %s1081_s26 }
  0x1e   : > { %p42_p12 = scmp.ge.s32.totalorder %s40_s11, 2  ;;  %p56_p13 = scmp.ne.s32.totalorder %s1081_s26, %s1077_s25 }
  0x1f   : > { %p57_p0 = scmp.eq.s32.totalorder %s1093_s29, 0  ;;  %p787_p4 = scmp.lt.s32.totalorder %s1093_s29, 2 }
  0x20   : > { %s1407_s11 = smov (%p42_p12, %s40_s11), 0  ;;  %p1220_p2 = por %p172_p11, %p56_p13 }
  0x21   : > { %s44_s13 = ssub.s32 %s1089_s28, %s1407_s11  ;;  %s286_s16 = sand.u32 1, %s1081_s26  }
  0x22   : > { %p47_p6 = scmp.eq.s32.totalorder %s44_s13, 0  ;;  %p58_p9 = por %p57_p0, %p56_p13 }
  0x23   : > { %s711_s17 = sshll.u32 %s286_s16, 3  ;;  %s712_s18 = sshll.u32 %s1089_s28, 3 }
  0x24   : > { %s1230_s19 = scalar_select %p47_p6, %s1081_s26, %s49_s12  }
  0x25   : > { %s1396_s0 = sld [smem:[#allocation16_spill]]  ;;  %s290_s8 = scalar_lea.vmem [#allocation2], %s711_s17 }
  0x26   : > { %s299_s1 = sshll.u32 %s290_s8, 4  ;;  %p772_p10 = pnand %p787_p4, %p58_p9  ;;  %s300_s1 = int_to_ptr.vmem [resolvable:$true] %s299_s1 }
  0x27   : > { %s287_s3 = scalar_lea.sflag [#allocation3], %s286_s16  ;;  %s1240_s12 = sand.u32 (!%p1200_p7), 1, %s1077_s25  }
  0x28   : > { %s1243_s13 = sshll.u32 (!%p1200_p7), %s1240_s12, 3  ;;  %s311_s17 = scalar_lea.sflag (!%p1200_p7), [#allocation3], %s1240_s12 }
  0x29   : > { %308 = sbr.rel (%p1200_p7) target bundleno = 589 (0x24d), region = 40  ;;  %s314_s8 = scalar_lea.vmem (!%p1200_p7), [#allocation2], %s1243_s13 }
  0x2b   : > { %s295_s22 = scalar_lea.hbm %s1396_s0, %s712_s18 }
  0x2c   : > { %s297_s23 = sshll.u32 %s295_s22, 4  ;;  %s298_s23 = int_to_ptr.hbm [resolvable:$true] %s297_s23 }
  0x2d   : > { %774 = dma.hbm_to_vmem [thread:$0]  (!%p772_p10), %s298_s23, 128, %s300_s1, %s287_s3  }
  0x2e   : > { %1056 = dma.done.wait (%p1187_p3), %s311_s17, 128  }
  0x2f   : > { %1058 = vsyncadd (%p1187_p3), %s311_s17, 4294967168 }
  0x30   : > { %1060 = dma.done.wait (%p63_p1), [#allocation6], 272  }
  0x31   : > { %1062 = vsyncadd (%p63_p1), [#allocation6], 4294967024  ;;  %vm370_vm0 = vcmask 261120   ;;  %v367_v0 = vld [vmem:[%s314_s8] sm:$0xff]  ;;  %v1099_v2 = vmov 32.0   ;;  %v743_v15 = vld [vmem:[#allocation7] sm:$0xff] }
  0x32   : > { %v371_v1 = vsel %vm370_vm0, %v367_v0, 0.0  ;;  %853 = vrcp.f32 %v1099_v2  ;;  %v744_v14 = vld [vmem:[#allocation7 + $0x8] sm:$0xff]  ;;  %v850_v25 = vld [vmem:[#allocation5] ss:$0 sm:$0xff]  ;;  %s1397_s2 = sld [smem:[#allocation18_spill]]  ;;  %vm446_vm5 = vcmask 125952  }
  0x33   : > { %372 = vadd.xlane.f32.xlu0 %v371_v1  ;;  %438 = vmatpush.bf16.msra.mxu0 %v744_v14  ;;  %s1398_s4 = sld [smem:[#allocation20_spill]]  ;;  %s1100_s16 = smov 48  }
  0x34   : > { %s1383_s18 = smov 64   ;;  %s351_s20 = scalar_lea.vmem [#allocation8], %s1243_s13 }
  0x35   : > { %s1102_s21 = smov 96   ;;  %s1103_s22 = smov 112  }
  0x36   : > { %s1104_s23 = smov 80   ;;  %s1268_s17 = sshll.u32 %s1085_s27, 3 }
  0x37   : > { %439 = vmatpush.bf16.msra.mxu0 %v743_v15  ;;  %s1271_s8 = scalar_lea.vmem [#allocation11], %s1243_s13  ;;  %s495_s9 = scalar_lea.hbm %s1379_s5, %s1268_s17 }
  0x38   : > { %v854_v3 = vpop.eup %853  ;;  %v851_v28 = vld [vmem:[%s1397_s2] ss:$0 sm:$0xff]  ;;  %s496_s14 = sshll.u32 %s351_s20, 4  ;;  %s473_s27 = scalar_lea.sflag [#allocation4], %s1240_s12  ;;  %s497_s14 = int_to_ptr.vmem [resolvable:$true] %s496_s14 }
  0x39   : > { %v375_v4 = vmul.f32 32.0, %v854_v3  ;;  %vm379_vm1 = vweird.f32 %v854_v3  ;;  %v852_v32 = vld [vmem:[%s1398_s4] ss:$0 sm:$0xff]  ;;  %s967_s1 = scalar_lea.hbm %s1379_s5, 16 }
  0x3b   : > { %v376_v5 = vsub.f32 1.0, %v375_v4 }
  0x3d   : > { %v377_v6 = vmul.f32 %v854_v3, %v376_v5 }
  0x3f   : > { %v378_v7 = vadd.f32 %v854_v3, %v377_v6 }
  0x41   : > { %v380_v8 = vsel %vm379_vm1, %v854_v3, %v378_v7 }
  0xa6   : > { %v373_v9 = vpop.xlane.xlu0 %372 }
  0xa7   : > { %v381_v10 = vmul.f32 %v380_v8, %v373_v9 }
  0xa9   : > { %v382_v11 = vsub.f32 %v367_v0, %v381_v10 }
  0xab   : > { %v383_v12 = vmul.f32 %v382_v11, %v382_v11 }
  0xad   : > { %v384_v13 = vsel %vm370_vm0, %v383_v12, 0.0 }
  0xae   : > { %385 = vadd.xlane.f32.xlu0 %v384_v13 }
 0x121   : > { %v386_v16 = vpop.xlane.xlu0 %385 }
 0x122   : > { %v387_v17 = vmul.f32 %v386_v16, %v380_v8 }
 0x124   : > { %v388_v18 = vadd.f32 1e-05, %v387_v17 }
 0x126   : > { %855 = vrsqrt.f32 %v388_v18  ;;  %vm395_vm3 = vweird.f32 %v388_v18 }
 0x12c   : > { %v856_v19 = vpop.eup %855 }
 0x12d   : > { %v390_v20 = vmul.f32 %v856_v19, %v388_v18  ;;  %vm396_vm2 = vweird.f32 %v856_v19 }
 0x12e   : > { %vm397_vm4 = vmor %vm395_vm3, %vm396_vm2 }
 0x12f   : > { %v391_v21 = vmul.f32 %v856_v19, %v390_v20 }
 0x131   : > { %v392_v22 = vmul.f32 0.5, %v391_v21 }
 0x133   : > { %v393_v23 = vsub.f32 1.5, %v392_v22 }
 0x135   : > { %v394_v24 = vmul.f32 %v856_v19, %v393_v23 }
 0x137   : > { %v398_v26 = vsel %vm397_vm4, %v856_v19, %v394_v24 }
 0x138   : > { %v399_v27 = vmul.f32 %v398_v26, %v382_v11 }
 0x13a   : > { %v403_v29 = vmul.f32 %v850_v25, %v399_v27 }
 0x13c   : > { %v407_v30 = vadd.f32 %v851_v28, %v403_v29 }
 0x13e   : > { %v408_v31 = vpack.c.bf16 %v407_v30, %v407_v30 }
 0x140   : > { %728 = vmatmul.msk.bf16.vlgmr.msra.gmra.mxu0 %vm370_vm0, %v408_v31 }
 0x1bd   : > { %v441_v33 = vpop.f32.mrf.mxu0 }
 0x1be   : > { %v442_v34 = vadd.f32 %v852_v32, %v441_v33 }
 0x1c0   : > { %v445_v35 = vpack.c.bf16 %v442_v34, %v442_v34 }
 0x1c2   : > { %467 = vrot.lane.b32.xlu0 %v445_v35, %s1100_s16  ;;  %453 = vrot.lane.b32.xlu2 %v445_v35, %s1383_s18  ;;  %447 = vst.msk [vmem:[%s351_s20] sm:$0xf] %vm446_vm5, %v445_v35  ;;  %s498_s16 = sshll.u32 %s495_s9, 4  ;;  %s499_s16 = int_to_ptr.hbm [resolvable:$true] %s498_s16 }
 0x1c3   : > { %449 = vrot.lane.b32.xlu1 %v445_v35, %s1102_s21  ;;  %s961_s21 = sshra.s32 %s499_s16, 4  ;;  %s962_s21 = int_to_ptr.hbm [resolvable:$true] %s961_s21 }
 0x1c4   : > { %p968_p11 = scmp.lt.s32.totalorder %s962_s21, %s1379_s5 }
 0x1c5   : > { %v443_v36 = vpop.f32.mrf.mxu0 }
 0x1ca   : > { %457 = vrot.lane.b32.xlu2 %v445_v35, %s1103_s22  ;;  %s963_s22 = scalar_lea.hbm %s962_s21, 8 }
 0x1cb   : > { %462 = vrot.lane.b32.xlu1 %v445_v35, %s1104_s23  ;;  %p964_p1 = scmp.ne.s32.totalorder %s962_s21, %s963_s22  ;;  %p969_p12 = scmp.lt.s32.totalorder %s967_s1, %s963_s22 }
 0x1cd   : > { %p965_p3 = pnand %p964_p1, %p1220_p2  ;;  %p970_p13 = por %p969_p12, %p968_p11 }
 0x1cf   : > { %p966_p7 = pneg %p965_p3 }
 0x1d1   : > { %p971_p0 = pnand %p970_p13, %p966_p7 }
 0x21c   : > { %v454_v37 = vpop.permute.xlu2 %453 }
 0x21d   : > { %456 = vst.msk [vmem:[%s1271_s8] sm:$0xf] %vm446_vm5, %v454_v37 }
 0x224   : > { %v458_v38 = vpop.permute.xlu2 %457 }
 0x225   : > { %729 = vst.msk [vmem:[%s351_s20 + $0x4] sm:$0xf] %vm446_vm5, %v458_v38 }
 0x226   : > { %974 = shalt.err (!%p971_p0)
}
 0x227   : > { %s1105_s12 = smov 4   ;;  %s1399_s20 = smov 64  }
 0x228   : > { %758 = dma.vmem_to_hbm [thread:$0]  (%p1220_p2), %s497_s14, 128, %s499_s16, %s473_s27, %s1399_s20, %s1399_s20, %s1105_s12  }
 0x229   : > { %s358_s0 = scalar_lea.vmem [#allocation9], %s1243_s13  ;;  %s513_s21 = scalar_lea.hbm %s1380_s6, %s1268_s17 }
 0x22a   : > { %s531_s1 = scalar_lea.hbm %s1381_s7, %s1268_s17  ;;  %s514_s3 = sshll.u32 %s358_s0, 4  ;;  %s515_s3 = int_to_ptr.vmem [resolvable:$true] %s514_s3 }
 0x22b   : > { %s477_s2 = sand.u32 1, %s1177_s30   ;;  %s516_s4 = sshll.u32 %s513_s21, 4  ;;  %s517_s4 = int_to_ptr.hbm [resolvable:$true] %s516_s4 }
 0x22c   : > { %s532_s14 = sshll.u32 %s1271_s8, 4  ;;  %s1308_s16 = sshll.u32 %s531_s1, 4  ;;  %s1310_s14 = int_to_ptr.vmem [resolvable:$true] %s532_s14  ;;  %s535_s16 = int_to_ptr.hbm [resolvable:$true] %s1308_s16 }
 0x22d   : > { %s1314_s13 = scalar_lea.sflag [#allocation10], %s477_s2  ;;  %s989_s27 = sshra.s32 %s517_s4, 4  ;;  %s990_s27 = int_to_ptr.hbm [resolvable:$true] %s989_s27 }
 0x22e   : > { %s991_s17 = scalar_lea.hbm %s990_s27, 8  ;;  %s995_s18 = scalar_lea.hbm %s1380_s6, 16 }
 0x22f   : > { %p992_p4 = scmp.ne.s32.totalorder %s990_s27, %s991_s17  ;;  %p996_p10 = scmp.lt.s32.totalorder %s990_s27, %s1380_s6 }
 0x230   : > { %p997_p1 = scmp.lt.s32.totalorder %s995_s18, %s991_s17 }
 0x231   : > { %p993_p6 = pnand %p992_p4, %p1220_p2 }
 0x232   : > { %p998_p3 = por %p997_p1, %p996_p10 }
 0x233   : > { %p994_p9 = pneg %p993_p6 }
 0x234   : > { %v468_v39 = vpop.permute.xlu0 %467 }
 0x235   : > { %731 = vst.msk [vmem:[%s1271_s8 + $0x4] sm:$0xf] %vm446_vm5, %v468_v39  ;;  %v450_v40 = vpop.permute.xlu1 %449  ;;  %p999_p7 = pnand %p998_p3, %p994_p9 }
 0x236   : > { %452 = vst.msk [vmem:[%s358_s0] sm:$0xf] %vm446_vm5, %v450_v40 }
 0x23d   : > { %v463_v41 = vpop.permute.xlu1 %462 }
 0x23e   : > { %730 = vst.msk [vmem:[%s358_s0 + $0x4] sm:$0xf] %vm446_vm5, %v463_v41 }
 0x23f   : > { %1002 = shalt.err (!%p999_p7)
}
 0x240   : > { %759 = dma.vmem_to_hbm [thread:$0]  (%p1220_p2), %s515_s3, 128, %s517_s4, %s1314_s13, %s1399_s20, %s1399_s20, %s1105_s12  }
 0x241   : > { %s1017_s2 = sshra.s32 %s535_s16, 4  ;;  %s1023_s1 = scalar_lea.hbm %s1381_s7, 16  ;;  %s1018_s2 = int_to_ptr.hbm [resolvable:$true] %s1017_s2 }
 0x242   : > { %s1019_s0 = scalar_lea.hbm %s1018_s2, 8  ;;  %p1024_p0 = scmp.lt.s32.totalorder %s1018_s2, %s1381_s7 }
 0x243   : > { %p1020_p11 = scmp.ne.s32.totalorder %s1018_s2, %s1019_s0  ;;  %p1025_p4 = scmp.lt.s32.totalorder %s1023_s1, %s1019_s0 }
 0x245   : > { %p1021_p12 = pnand %p1020_p11, %p1220_p2  ;;  %p1026_p6 = por %p1025_p4, %p1024_p0 }
 0x247   : > { %p1022_p13 = pneg %p1021_p12 }
 0x249   : > { %p1027_p9 = pnand %p1026_p6, %p1022_p13 }
 0x24b   : > { %1030 = shalt.err (!%p1027_p9)
}
 0x24c   : > { %760 = dma.vmem_to_hbm [thread:$0]  (%p1220_p2), %s1310_s14, 128, %s535_s16, %s1314_s13, %s1399_s20, %s1399_s20, %s1105_s12  }
 0x24d PF: > { %s549_s4 = sand.u32 1, %s1073_s24   ;;  %p776_p10 = pnand %p710_p8, %p1192_p5 }
 0x24e   : > { %s550_s3 = scalar_lea.sflag [#allocation4], %s549_s4 }
 0x24f   : > { %p777_p1 = pneg %p776_p10 }
 0x251   : > { %1064 = dma.done.wait (%p777_p1), %s550_s3, 128  }
 0x252   : > { %1066 = vsyncadd (%p777_p1), %s550_s3, 4294967168  ;;  %s1400_s15 = sadd.s32 4294967294, %s1093_s29  }
 0x253   : > { %s559_s30 = sand.u32 1, %s1400_s15  }
 0x254   : > { %s560_s8 = scalar_lea.sflag [#allocation10], %s559_s30 }
 0x255   : > { %1068 = dma.done.wait (%p777_p1), %s560_s8, 256  }
 0x256   : > { %1070 = vsyncadd (%p777_p1), %s560_s8, 4294967040  ;;  %s28_s29 = sadd.s32 1, %s1093_s29   ;;  %s1401_s24 = smov %s1077_s25 }
 0x257   : > { %p25_p2 = scmp.ge.s32.totalorder %s28_s29, 4   ;;  %s1402_s25 = smov %s1081_s26 }
 0x258   : > { %s1403_s26 = smov %s1230_s19  ;;  %s1404_s27 = smov %s1089_s28 }
 0x259   : > { %s1405_s28 = smov %s1407_s11  ;;  %27 = sbr.rel (!%p25_p2) target bundleno = 15 (0xf), region = 128 }
 0x25e   :  { %576 = vsyncpa [#allocation3], 1 }
 0x25f   :  { %578 = vsyncpa [#allocation3 + $0x1], 1 }
 0x260   :  { %579 = vsyncpa [#allocation6], 1 }
 0x261   :  { %580 = vsyncpa [#allocation4], 1 }
 0x262   :  { %582 = vsyncpa [#allocation4 + $0x1], 1 }
 0x263   :  { %583 = vsyncpa [#allocation10], 1 }
 0x264   :  { %585 = vsyncpa [#allocation10 + $0x1], 1 }

</bundles_post_ra>
